<compile_context>
chip_gen: v7x
topology: tpu7x:2x2x1
jax: 0.10.0
libtpu: 0.0.40
codegen_flags: <defaults>
</compile_context>

<pallas_src>
import functools

import jax
import jax.numpy as jnp
from jax.experimental import pallas as pl
from jax.experimental.pallas import tpu as pltpu


# ----------------------------------------------------------------------------
# Helpers
# ----------------------------------------------------------------------------
def _round_up(n, m):
    return ((n + m - 1) // m) * m


def _cdiv(a, b):
    return (a + b - 1) // b


def _choose_batch_tiling(B, block_b, min_parallel_b=256):
    """Minimal-padding batch tiling.

    B < min_parallel_b : single grid step, tb = round_up(B, 8).
    otherwise          : >= 2 steps (dual-TC sharding on v7x via the
                         "parallel" grid axis), tb = round_up(ceil(B/steps), 8)
                         so padding is < tb rather than rounding B up to the
                         next multiple of block_b.
    """
    if B < min_parallel_b:
        steps = 1
    else:
        steps = max(2, _cdiv(B, block_b))
    tb = _round_up(_cdiv(B, steps), 8)
    return tb, tb * steps, steps


def _apply_nonlin(m, nonlin):
    if nonlin == "ReLU":
        return jnp.maximum(m, 0.0)
    if nonlin == "Tanh":
        return jnp.tanh(m)
    return m  # nonlin == ' '


def _stable_sigmoid(o):
    # sigmoid(o) = 1/(1+exp(-o))  (o>=0)   = exp(o)/(1+exp(o))  (o<0)
    e = jnp.exp(-jnp.abs(o))
    r = 1.0 / (1.0 + e)          # exact reciprocal; EUP/VALU have slack here
    return jnp.where(o >= 0.0, r, e * r)


# ----------------------------------------------------------------------------
# Kernels
# ----------------------------------------------------------------------------
def _mlp2_kernel(x_ref, w1_ref, b1_ref, w2_ref, b2_ref, o_ref, *, nonlin,
                 out_size):
    # linear1: (tb, D) @ (D, H) on the MXU, f32 accumulation.
    m = jnp.dot(x_ref[...], w1_ref[...],
                preferred_element_type=jnp.float32) + b1_ref[...]
    n = _apply_nonlin(m, nonlin)
    if out_size == 1:
        # (H, 1) RHS would use a single MXU column: VPU multiply + XLU reduce.
        # b2 is a scalar living in SMEM.
        o = jnp.sum(n * w2_ref[...], axis=-1, keepdims=True) + b2_ref[0]
    else:
        o = jnp.dot(n, w2_ref[...],
                    preferred_element_type=jnp.float32) + b2_ref[...]
    o_ref[...] = _stable_sigmoid(o)       # (tb, out_size) f32, no padding


def _mlp1_kernel(x_ref, w_ref, b_ref, o_ref, *, out_size):
    # single-linear path (hiddensize == 0, or the folded no-nonlinearity MLP)
    if out_size == 1:
        o = jnp.sum(x_ref[...] * w_ref[...], axis=-1, keepdims=True) + b_ref[0]
    else:
        o = jnp.dot(x_ref[...], w_ref[...],
                    preferred_element_type=jnp.float32) + b_ref[...]
    o_ref[...] = _stable_sigmoid(o)


# ----------------------------------------------------------------------------
# pallas_call wrappers
# ----------------------------------------------------------------------------
def _pad_batch(x, Bp):
    B = x.shape[0]
    if Bp != B:
        x = jnp.pad(x, ((0, Bp - B), (0, 0)))
    return x


def _compiler_params():
    # batch axis is independent -> "parallel" (megacore on v7x, no-op elsewhere)
    return pltpu.CompilerParams(dimension_semantics=("parallel",))


def _two_layer_call(x, w1, b1, w2, b2, nonlin, block_b):
    B, D = x.shape
    H = w1.shape[1]
    O = w2.shape[1]

    tb, Bp, steps = _choose_batch_tiling(B, block_b)
    xp = _pad_batch(x, Bp)

    w1f = w1.astype(jnp.float32)
    b1f = b1.reshape(1, H).astype(jnp.float32)
    if O == 1:
        w2_arg = w2.reshape(1, H).astype(jnp.float32)        # row vector (VPU)
        b2_arg = b2.reshape(1).astype(jnp.float32)           # scalar -> SMEM
        b2_spec = pl.BlockSpec(memory_space=pltpu.MemorySpace.SMEM)
    else:
        w2_arg = w2.astype(jnp.float32)
        b2_arg = b2.reshape(1, O).astype(jnp.float32)
        b2_spec = pl.BlockSpec((1, O), lambda i: (0, 0))

    flops = 2 * Bp * D * H + 2 * Bp * H * O
    transc = Bp * O + (Bp * H if nonlin == "Tanh" else 0)
    bytes_acc = 4 * (xp.size + w1f.size + b1f.size + w2_arg.size +
                     b2_arg.size + Bp * O)

    kernel = functools.partial(_mlp2_kernel, nonlin=nonlin, out_size=O)
    out = pl.pallas_call(
        kernel,
        out_shape=jax.ShapeDtypeStruct((Bp, O), jnp.float32),
        grid=(steps,),
        in_specs=[
            pl.BlockSpec((tb, D), lambda i: (i, 0)),     # x streams over batch
            pl.BlockSpec((D, H), lambda i: (0, 0)),      # weights grid-invariant
            pl.BlockSpec((1, H), lambda i: (0, 0)),
            pl.BlockSpec(w2_arg.shape, lambda i: (0, 0)),
            b2_spec,
        ],
        out_specs=pl.BlockSpec((tb, O), lambda i: (i, 0)),
        compiler_params=_compiler_params(),
        cost_estimate=pl.CostEstimate(flops=int(flops),
                                      transcendentals=int(transc),
                                      bytes_accessed=int(bytes_acc)),
    )(xp, w1f, b1f, w2_arg, b2_arg)
    return out[:B] if Bp != B else out


def _single_layer_call(x, w, b, block_b):
    B, D = x.shape
    O = w.shape[1]

    tb, Bp, steps = _choose_batch_tiling(B, block_b)
    xp = _pad_batch(x, Bp)

    if O == 1:
        w_arg = w.reshape(1, D).astype(jnp.float32)           # row vector (VPU)
        b_arg = b.reshape(1).astype(jnp.float32)              # scalar -> SMEM
        b_spec = pl.BlockSpec(memory_space=pltpu.MemorySpace.SMEM)
    else:
        w_arg = w.astype(jnp.float32)
        b_arg = b.reshape(1, O).astype(jnp.float32)
        b_spec = pl.BlockSpec((1, O), lambda i: (0, 0))

    flops = 2 * Bp * D * O
    transc = Bp * O
    bytes_acc = 4 * (xp.size + w_arg.size + b_arg.size + Bp * O)

    kernel = functools.partial(_mlp1_kernel, out_size=O)
    out = pl.pallas_call(
        kernel,
        out_shape=jax.ShapeDtypeStruct((Bp, O), jnp.float32),
        grid=(steps,),
        in_specs=[
            pl.BlockSpec((tb, D), lambda i: (i, 0)),
            pl.BlockSpec(w_arg.shape, lambda i: (0, 0)),
            b_spec,
        ],
        out_specs=pl.BlockSpec((tb, O), lambda i: (i, 0)),
        compiler_params=_compiler_params(),
        cost_estimate=pl.CostEstimate(flops=int(flops),
                                      transcendentals=int(transc),
                                      bytes_accessed=int(bytes_acc)),
    )(xp, w_arg, b_arg)
    return out[:B] if Bp != B else out


# ----------------------------------------------------------------------------
# Public forward / params
# ----------------------------------------------------------------------------
def fold_params(params, *, hiddensize, nonlin):
    """One-time fold for nonlin == ' ': two linears are algebraically one.

    Call this once at parameter-load time so the fold is not redone per step.
    """
    if hiddensize > 0 and nonlin == " ":
        return {"w": params["w1"] @ params["w2"],
                "b": params["b1"] @ params["w2"] + params["b2"]}
    return params


def author_predict_forward(x, params, *, hiddensize, nonlin, block_b=512):
    """Pallas forward for AuthorPredict.

    x: (B, input_size) float32; params stored pre-transposed as (in, out).
    """
    if x.dtype != jnp.float32:
        x = x.astype(jnp.float32)
    if hiddensize > 0 and nonlin != " ":
        return _two_layer_call(x, params["w1"], params["b1"],
                               params["w2"], params["b2"], nonlin, block_b)
    if hiddensize > 0 and "w" not in params:
        # Caller did not pre-fold; fold here (prefer fold_params() up front).
        params = fold_params(params, hiddensize=hiddensize, nonlin=nonlin)
    return _single_layer_call(x, params["w"], params["b"], block_b)


def init_params(key, input_size, hiddensize, output_size=1):
    params = {}
    if hiddensize > 0:
        k1, k2, k3, k4 = jax.random.split(key, 4)
        bound1 = 1.0 / (input_size ** 0.5)
        bound2 = 1.0 / (hiddensize ** 0.5)
        params["w1"] = jax.random.uniform(
            k1, (input_size, hiddensize), jnp.float32, -bound1, bound1)
        params["b1"] = jax.random.uniform(
            k2, (1, hiddensize), jnp.float32, -bound1, bound1)
        params["w2"] = jax.random.uniform(
            k3, (hiddensize, output_size), jnp.float32, -bound2, bound2)
        params["b2"] = jax.random.uniform(
            k4, (1, output_size), jnp.float32, -bound2, bound2)
    else:
        k1, k2 = jax.random.split(key, 2)
        bound = 1.0 / (input_size ** 0.5)
        params["w"] = jax.random.uniform(
            k1, (input_size, output_size), jnp.float32, -bound, bound)
        params["b"] = jax.random.uniform(
            k2, (1, output_size), jnp.float32, -bound, bound)
    return params


def reference_forward(x, params, *, hiddensize, nonlin):
    """Pure-JAX f32 reference mirroring the PyTorch forward."""
    if hiddensize > 0:
        m = x @ params["w1"] + params["b1"]
        if nonlin == "ReLU":
            n = jnp.maximum(m, 0.0)
        elif nonlin == "Tanh":
            n = jnp.tanh(m)
        else:
            n = m
        o = n @ params["w2"] + params["b2"]
    else:
        o = x @ params["w"] + params["b"]
    return jax.nn.sigmoid(o)


# ----------------------------------------------------------------------------
if __name__ == "__main__":
    key = jax.random.PRNGKey(0)
    kx, kp, kx2, kp0 = jax.random.split(key, 4)

    input_size = 32
    hiddensize = 32
    output_size = 1

    # Main config (matches the PyTorch module defaults): batch=8, ReLU.
    batch = 8
    x = jax.random.normal(kx, (batch, input_size), jnp.float32)
    params = init_params(kp, input_size, hiddensize, output_size)

    # nonlin == ' ' : fold once at "load" time.
    params_folded = fold_params(params, hiddensize=hiddensize, nonlin=" ")

    # hiddensize == 0 path (single linear + sigmoid).
    params0 = init_params(kp0, input_size, 0, output_size)

    # Larger batch: exercises 2 grid steps + minimal batch padding (300 -> 304).
    xb = jax.random.normal(kx2, (300, input_size), jnp.float32)

    # (x, kernel params, reference params, hiddensize, nonlin)
    configs = [
        (x, params, params, hiddensize, "ReLU"),
        (x, params, params, hiddensize, "Tanh"),
        (x, params_folded, params, hiddensize, " "),
        (x, params0, params0, 0, " "),
        (xb, params, params, hiddensize, "ReLU"),
    ]

    for xi, p_kernel, p_ref, hs, nl in configs:
        out = author_predict_forward(xi, p_kernel, hiddensize=hs, nonlin=nl)
        out = jax.block_until_ready(out)
        ref = reference_forward(xi, p_ref, hiddensize=hs, nonlin=nl)
        assert out.shape == (xi.shape[0], output_size), (out.shape, xi.shape)
        assert jnp.allclose(out, ref, atol=1e-2, rtol=1e-2), (
            f"mismatch vs reference (hidden={hs}, nonlin={nl!r})")

    print("KERNEL_OK")
</pallas_src>

<mosaic_0001>
module attributes {stable_mosaic.version = 11 : i64} {
  func.func @_mlp2_kernel(%arg0: i32, %arg1: memref<8x32xf32, #tpu.memory_space<vmem>>, %arg2: memref<32x32xf32, #tpu.memory_space<vmem>>, %arg3: memref<1x32xf32, #tpu.memory_space<vmem>>, %arg4: memref<1x32xf32, #tpu.memory_space<vmem>>, %arg5: memref<1xf32, #tpu.memory_space<smem>>, %arg6: memref<8x1xf32, #tpu.memory_space<vmem>>) attributes {dimension_semantics = [#tpu.dimension_semantics<parallel>], iteration_bounds = array<i64: 1>, scalar_prefetch = 0 : i64, scratch_operands = 0 : i64, tpu.core_type = #tpu.core_type<tc>, window_params = [{transform_indices = @transform_0, window_bounds = array<i64: 8, 32>}, {pipeline_mode = #tpu.pipeline_mode<synchronous>, transform_indices = @transform_1, window_bounds = array<i64: 32, 32>}, {pipeline_mode = #tpu.pipeline_mode<synchronous>, transform_indices = @transform_2, window_bounds = array<i64: 1, 32>}, {pipeline_mode = #tpu.pipeline_mode<synchronous>, transform_indices = @transform_3, window_bounds = array<i64: 1, 32>}, {transform_indices = @transform_4, window_bounds = array<i64: 1>}, {transform_indices = @transform_5, window_bounds = array<i64: 8, 1>}]} {
    %c0 = arith.constant 0 : index
    %c0_0 = arith.constant 0 : index
    %0 = vector.load %arg1[%c0, %c0_0] : memref<8x32xf32, #tpu.memory_space<vmem>>, vector<8x32xf32>
    %c0_1 = arith.constant 0 : index
    %c0_2 = arith.constant 0 : index
    %1 = vector.load %arg2[%c0_1, %c0_2] : memref<32x32xf32, #tpu.memory_space<vmem>>, vector<32x32xf32>
    %cst = arith.constant dense<0.000000e+00> : vector<8x32xf32>
    %2 = tpu.matmul %0, %1, %cst {dimension_numbers = #tpu.dot_dimension_numbers<[1], [0], [0], [1], [0, 0, 1, 1], [], []>} : vector<8x32xf32>, vector<32x32xf32>, vector<8x32xf32> -> vector<8x32xf32>
    %c0_3 = arith.constant 0 : index
    %c0_4 = arith.constant 0 : index
    %3 = vector.load %arg3[%c0_3, %c0_4] : memref<1x32xf32, #tpu.memory_space<vmem>>, vector<1x32xf32>
    %4 = vector.broadcast %3 : vector<1x32xf32> to vector<8x32xf32>
    %5 = arith.addf %2, %4 : vector<8x32xf32>
    %cst_5 = arith.constant 0.000000e+00 : f32
    %6 = vector.broadcast %cst_5 : f32 to vector<8x32xf32>
    %7 = arith.maximumf %5, %6 : vector<8x32xf32>
    %c0_6 = arith.constant 0 : index
    %c0_7 = arith.constant 0 : index
    %8 = vector.load %arg4[%c0_6, %c0_7] : memref<1x32xf32, #tpu.memory_space<vmem>>, vector<1x32xf32>
    %9 = vector.broadcast %8 : vector<1x32xf32> to vector<8x32xf32>
    %10 = arith.mulf %7, %9 : vector<8x32xf32>
    %cst_8 = arith.constant dense<0.000000e+00> : vector<8xf32>
    %11 = vector.multi_reduction <add>, %10, %cst_8 [1] : vector<8x32xf32> to vector<8xf32>
    %12 = vector.shape_cast %11 : vector<8xf32> to vector<8x1xf32>
    %c0_9 = arith.constant 0 : index
    %13 = memref.load %arg5[%c0_9] : memref<1xf32, #tpu.memory_space<smem>>
    %14 = vector.broadcast %13 : f32 to vector<8x1xf32>
    %15 = arith.addf %12, %14 : vector<8x1xf32>
    %16 = math.absf %15 : vector<8x1xf32>
    %cst_10 = arith.constant 0.000000e+00 : f32
    %17 = vector.broadcast %cst_10 : f32 to vector<8x1xf32>
    %18 = arith.subf %17, %16 : vector<8x1xf32>
    %19 = math.exp %18 : vector<8x1xf32>
    %cst_11 = arith.constant 1.000000e+00 : f32
    %20 = vector.broadcast %cst_11 : f32 to vector<8x1xf32>
    %21 = arith.addf %20, %19 : vector<8x1xf32>
    %cst_12 = arith.constant 1.000000e+00 : f32
    %22 = vector.broadcast %cst_12 : f32 to vector<8x1xf32>
    %23 = arith.divf %22, %21 : vector<8x1xf32>
    %cst_13 = arith.constant 0.000000e+00 : f32
    %24 = vector.broadcast %cst_13 : f32 to vector<8x1xf32>
    %25 = arith.cmpf oge, %15, %24 : vector<8x1xf32>
    %26 = arith.mulf %19, %23 : vector<8x1xf32>
    %27 = arith.select %25, %23, %26 : vector<8x1xi1>, vector<8x1xf32>
    %c0_14 = arith.constant 0 : index
    %c0_15 = arith.constant 0 : index
    %28 = vector.load %arg6[%c0_14, %c0_15] : memref<8x1xf32, #tpu.memory_space<vmem>>, vector<8x1xf32>
    tpu.vector_store %arg6[%c0_14, %c0_15], %27 {strides = array<i32>} : memref<8x1xf32, #tpu.memory_space<vmem>>, vector<8x1xf32>,
    return
  }
  func.func @transform_0(%arg0: i32) -> (i32, i32) {
    %c0_i32 = arith.constant 0 : i32
    %c0_i32_0 = arith.constant 0 : i32
    return %arg0, %c0_i32 : i32, i32
  }
  func.func @transform_1(%arg0: i32) -> (i32, i32) {
    %c0_i32 = arith.constant 0 : i32
    %c0_i32_0 = arith.constant 0 : i32
    %c0_i32_1 = arith.constant 0 : i32
    return %c0_i32, %c0_i32_0 : i32, i32
  }
  func.func @transform_2(%arg0: i32) -> (i32, i32) {
    %c0_i32 = arith.constant 0 : i32
    %c0_i32_0 = arith.constant 0 : i32
    %c0_i32_1 = arith.constant 0 : i32
    return %c0_i32, %c0_i32_0 : i32, i32
  }
  func.func @transform_3(%arg0: i32) -> (i32, i32) {
    %c0_i32 = arith.constant 0 : i32
    %c0_i32_0 = arith.constant 0 : i32
    %c0_i32_1 = arith.constant 0 : i32
    return %c0_i32, %c0_i32_0 : i32, i32
  }
  func.func @transform_4(%arg0: i32) -> i32 {
    %c0_i32 = arith.constant 0 : i32
    %c0_i32_0 = arith.constant 0 : i32
    return %c0_i32 : i32
  }
  func.func @transform_5(%arg0: i32) -> (i32, i32) {
    %c0_i32 = arith.constant 0 : i32
    %c0_i32_0 = arith.constant 0 : i32
    return %arg0, %c0_i32 : i32, i32
  }
}

</mosaic_0001>

<bundles_post_ra>
// kernel: tpu_custom_call.1
= control target key start
LH: loop header
LB: loop body
LE: loop exit
PB: predicated region body
PF: predicated region fallthrough
CT: control target
= control target key end

     0   :  { %11 = vsyncpa [#allocation4], 0  ;;  %s330_s0 = inlined_call_operand.hbm [shape: f32[8,32], index: 0, kind: input, shape index: {}]   ;;  %s331_s1 = inlined_call_operand.hbm [shape: f32[32,32], index: 1, kind: input, shape index: {}]   ;;  %s332_s2 = inlined_call_operand.vmem [shape: f32[1,32], index: 2, kind: input, shape index: {}]   ;;  %s333_s3 = inlined_call_operand.vmem [shape: f32[1,32], index: 3, kind: input, shape index: {}]   ;;  %s334_s4 = inlined_call_operand.<no memory space> [shape: f32[1], index: 4, kind: input, shape index: {}]   ;;  %s335_s5 = inlined_call_operand.vmem [shape: f32[8,1], index: 5, kind: output, shape index: {}]  }
   0x1   :  { %12 = vsyncpa [#allocation6], 0  ;;  %s250_s18 = smov [#allocation3]   ;;  %s251_s20 = smov [#allocation5]  }
   0x2   :  { %s19_s19 = sshll.u32 %s250_s18, 4  ;;  %s28_s21 = sshll.u32 %s251_s20, 4  ;;  %s20_s19 = int_to_ptr.vmem [resolvable:$true] %s19_s19  ;;  %s287_s21 = int_to_ptr.vmem [resolvable:$true] %s28_s21 }
   0x3   :  { %s202_s24 = scalar_lea.hbm %s330_s0, 128 }
   0x4   :  { %p203_p0 = scmp.ne.s32.totalorder %s330_s0, %s202_s24  ;;  %p206_p1 = scmp.lt.u32.totalorder %s202_s24, %s330_s0 }
   0x6   :  { %p208_p2 = pnand %p206_p1, %p203_p0 }
   0x8   :  { %211 = shalt.err (!%p208_p2)
}
   0x9   :  { %s212_s29 = scalar_lea.vmem %s20_s19, 128  ;;  %p217_p4 = scmp.lt.s32.totalorder %s20_s19, %s20_s19 }
   0xa   :  { %p213_p3 = scmp.ne.s32.totalorder %s20_s19, %s212_s29  ;;  %p218_p5 = scmp.lt.s32.totalorder %s212_s29, %s212_s29 }
   0xc   :  { %p219_p6 = por %p218_p5, %p217_p4 }
   0xe   :  { %p220_p7 = pnand %p219_p6, %p213_p3 }
  0x10   :  { %223 = shalt.err (!%p220_p7)
}
  0x11   :  { %22 = dma.hbm_to_vmem [thread:$0]  %s330_s0, 128, %s20_s19, [#allocation4]  }
  0x12   :  { %s224_s9 = scalar_lea.hbm %s331_s1, 512 }
  0x13   :  { %p225_p8 = scmp.ne.s32.totalorder %s331_s1, %s224_s9  ;;  %p228_p9 = scmp.lt.u32.totalorder %s224_s9, %s331_s1 }
  0x15   :  { %p230_p10 = pnand %p228_p9, %p225_p8 }
  0x17   :  { %233 = shalt.err (!%p230_p10)
}
  0x18   :  { %s234_s14 = scalar_lea.vmem %s287_s21, 512  ;;  %p239_p12 = scmp.lt.s32.totalorder %s287_s21, %s287_s21 }
  0x19   :  { %p235_p11 = scmp.ne.s32.totalorder %s287_s21, %s234_s14  ;;  %p240_p13 = scmp.lt.s32.totalorder %s234_s14, %s234_s14 }
  0x1b   :  { %p241_p0 = por %p240_p13, %p239_p12 }
  0x1d   :  { %p242_p1 = pnand %p241_p0, %p235_p11 }
  0x1f   :  { %245 = shalt.err (!%p242_p1)
}
  0x20   :  { %s252_s0 = smov 128   ;;  %s253_s15 = smov 8  }
  0x21   :  { %34 = dma.hbm_to_vmem [thread:$0]  %s331_s1, 512, %s287_s21, [#allocation6], %s252_s0, %s252_s0, %s253_s15  }
  0x22   :  { %246 = dma.done.wait [#allocation4], 128  }
  0x23   :  { %247 = vsyncadd [#allocation4], 4294967168 }
  0x24   :  { %248 = dma.done.wait [#allocation6], 512  }
  0x25   :  { %249 = vsyncadd [#allocation6], 4294966784  ;;  %v254_v0 = vmov 0.0|0.0   ;;  %vm255_vm0 = vmmov 0   ;;  %v256_v1 = vmov 0.0   ;;  %v48_v2 = vld [vmem:[#allocation5] sm:$0xff]  ;;  %v146_v17 = vstv %s334_s4 }
  0x26   :  { %185 = vmatprep.subr.bf16.mxu0 %v254_v0  ;;  %182 = vmatprep.mubr.msk.f32.mxu0 %vm255_vm0, %v256_v1  ;;  %v49_v3 = vld [vmem:[#allocation5 + $0x8] sm:$0xff]  ;;  %v50_v4 = vld [vmem:[#allocation5 + $0x10] sm:$0xff]  ;;  %v51_v6 = vld [vmem:[#allocation5 + $0x18] sm:$0xff]  ;;  %vm59_vm1 = vcmask 261120   ;;  %vm158_vm2 = vcmask 7168  }
  0x27   :  { %v186_v5 = vpack.c.bf16 %v49_v3, %v48_v2  ;;  %v189_v7 = vpack.c.bf16 %v51_v6, %v50_v4  ;;  %v47_v8 = vld [vmem:[#allocation3] sm:$0xff] }
  0x28   :  { %v166_v9 = vld [vmem:[%s332_s2] ss:$0 sm:$0xff] }
  0x29   :  { %187 = vmatpush3.bf16.msra.mxu0 %v186_v5  ;;  %v168_v13 = vld [vmem:[%s333_s3] ss:$0 sm:$0xff] }
  0x2a   :  { %188 = vmatprep.subr.bf16.mxu0 %v254_v0 }
  0x2d   :  { %190 = vmatpush3.bf16.msra.mxu0 %v189_v7 }
  0x30   :  { %183 = vmatmul.mubr.msk.f32.vlgmr.msra.gmra.mrb[0].mxu0 %vm59_vm1, %v47_v8 }
 0x103   :  { %v129_v10 = vpop.f32.mrb[0].mxu0 }
 0x104   :  { %v130_v11 = vadd.f32 %v166_v9, %v129_v10  ;;  %v184_v12 = vpop.f32.mrb[1].mxu0 }
 0x106   :  { %v133_v14 = vmax.f32 %v130_v11, 0.0 }
 0x108   :  { %v141_v15 = vmul.f32 %v168_v13, %v133_v14 }
 0x10a   :  { %v142_v16 = vsel %vm59_vm1, %v141_v15, 0.0 }
 0x10b   :  { %143 = vadd.xlane.f32.xlu0 %v142_v16 }
 0x198   :  { %v144_v18 = vpop.xlane.xlu0 %143 }
 0x199   :  { %v147_v19 = vadd.f32 %v146_v17, %v144_v18 }
 0x19b   :  { %v148_v20 = vand.u32 2147483647, %v147_v19  ;;  %vm155_vm3 = vcmp.ge.f32.partialorder %v147_v19, 0.0 }
 0x19d   :  { %v149_v21 = vsub.f32 0.0, %v148_v20 }
 0x19f   :  { %v150_v22 = vmul.f32 1.442695, %v149_v21 }
 0x1a1   :  { %198 = vpow2.f32 %v150_v22 }
 0x1ab   :  { %v199_v23 = vpop.eup %198 }
 0x1ac   :  { %v152_v24 = vadd.f32 1.0, %v199_v23 }
 0x1ae   :  { %200 = vrcp.f32 %v152_v24 }
 0x1b8   :  { %v201_v25 = vpop.eup %200 }
 0x1b9   :  { %v156_v26 = vmul.f32 %v201_v25, %v199_v23 }
 0x1bb   :  { %v157_v27 = vsel %vm155_vm3, %v201_v25, %v156_v26 }
 0x1bc   :  { %159 = vst.msk [vmem:[%s335_s5] sm:$0xff] %vm158_vm2, %v157_v27 }
 0x1bd   :  { %164 = vsyncpa [#allocation4], 1 }
 0x1be   :  { %165 = vsyncpa [#allocation6], 1 }

</bundles_post_ra>
